<compile_context>
chip_gen: v5e
topology: v5e:2x2
jax: 0.10.0
libtpu: 0.0.40
codegen_flags: <defaults>
</compile_context>

<pallas_src>
import functools

import jax
import jax.numpy as jnp
import numpy as np
from jax.experimental import pallas as pl
from jax.experimental.pallas import tpu as pltpu

MAX_LENGTH = 15
SELU_ALPHA = 1.6732632423543772
SELU_SCALE = 1.0507009873554805


# ----------------------------------------------------------------------------
# Parameter packing: one weight slab + one bias slab.
# ----------------------------------------------------------------------------
def _col_layout(H, V, L):
    """Column offsets of each parameter inside the packed (rows, w_cols) slab."""
    c_g1 = 0                      # GRU1 packed weight  (2H, 4H)
    c_g2 = 4 * H                  # GRU2 packed weight  (2H, 4H)
    c_emb = 8 * H                 # embedding           (V, H)
    c_comb = 9 * H                # attn_combine        (2H, H)
    c_out = 10 * H                # out proj, rows H:2H (2H, V)  (rows 0:H zero)
    c_attn = 10 * H + V           # attn                (2H, L) + zero pad to slab end
    w_cols = -(-(c_attn + L) // 128) * 128
    rows = -(-max(2 * H, V) // 8) * 8
    return c_g1, c_g2, c_emb, c_comb, c_out, c_attn, w_cols, rows


def pack_params(raw):
    """Pack the raw (PyTorch-layout, pre-transposed) params into two slabs."""
    V, H = raw["emb"].shape
    L = raw["attn_w"].shape[1]
    twoH = 2 * H
    c_g1, c_g2, c_emb, c_comb, c_out, c_attn, w_cols, rows = _col_layout(H, V, L)

    w = np.zeros((rows, w_cols), np.float32)
    b = np.zeros((1, w_cols), np.float32)

    def pack_gru(wi, wh, bi, bh):
        # wi/wh: (H, 3H) pre-transposed, gates [r|z|n]; bi/bh: (1, 3H).
        wi, wh, bi, bh = map(np.asarray, (wi, wh, bi, bh))
        wc = np.zeros((twoH, 4 * H), np.float32)
        bc = np.zeros((1, 4 * H), np.float32)
        wc[:H, 0:2 * H] = wi[:, 0:2 * H]              # [wi_r | wi_z]
        wc[:H, 2 * H:3 * H] = wi[:, 2 * H:3 * H]      # wi_n
        wc[H:twoH, 0:2 * H] = wh[:, 0:2 * H]          # [wh_r | wh_z]
        wc[H:twoH, 3 * H:4 * H] = wh[:, 2 * H:3 * H]  # wh_n
        bc[:, 0:2 * H] = bi[:, 0:2 * H] + bh[:, 0:2 * H]   # r/z biases pre-summed
        bc[:, 2 * H:3 * H] = bi[:, 2 * H:3 * H]             # bi_n
        bc[:, 3 * H:4 * H] = bh[:, 2 * H:3 * H]             # bh_n
        return wc, bc

    for name, c in (("g1", c_g1), ("g2", c_g2)):
        wc, bc = pack_gru(raw[f"{name}_wi"], raw[f"{name}_wh"],
                          raw[f"{name}_bi"], raw[f"{name}_bh"])
        w[:twoH, c:c + 4 * H] = wc
        b[:, c:c + 4 * H] = bc

    w[:V, c_emb:c_emb + H] = np.asarray(raw["emb"])
    w[:twoH, c_comb:c_comb + H] = np.asarray(raw["comb_w"])
    b[:, c_comb:c_comb + H] = np.asarray(raw["comb_b"])
    # out weight lives in rows H:2H so the [h1_new | h2_new] concat (needed for
    # the packed output anyway) can be used directly as the matmul LHS.
    w[H:twoH, c_out:c_out + V] = np.asarray(raw["out_w"])
    b[:, c_out:c_out + V] = np.asarray(raw["out_b"])
    w[:twoH, c_attn:c_attn + L] = np.asarray(raw["attn_w"])
    b[:, c_attn:c_attn + L] = np.asarray(raw["attn_b"])
    b[:, c_attn + L:] = -1e30      # mask the zero-padded softmax lanes

    return jnp.asarray(w), jnp.asarray(b)


# ----------------------------------------------------------------------------
# Fused multi-step decoder kernel.
# ----------------------------------------------------------------------------
def _make_decoder_kernel(B, H, V, L, w_cols):
    twoH = 2 * H
    c_g1, c_g2, c_emb, c_comb, c_out, c_attn, w_cols_l, _ = _col_layout(H, V, L)
    assert w_cols_l == w_cols

    def _expm1_neg(x):
        # exact identity expm1(x) = 2*tanh(x/2) / (1 - tanh(x/2)); for x <= 0 the
        # denominator is in [1, 2) -> no cancellation near 0 and no overflow.
        t = jnp.tanh(0.5 * x)
        return 2.0 * t / (1.0 - t)

    def kernel(tok_ref, h1i_ref, h2i_ref, enc_ref, w_ref, b_ref,
               out_ref, h1_s, h2_s):
        t = pl.program_id(0)
        dot = lambda a, w: jnp.dot(a, w, preferred_element_type=jnp.float32)

        @pl.when(t == 0)
        def _():                      # load the initial hidden state once
            h1_s[...] = h1i_ref[...]
            h2_s[...] = h2i_ref[...]

        h1 = h1_s[...]                                          # (B, H)
        h2 = h2_s[...]                                          # (B, H)

        # --- embedding lookup as a one-hot matmul ---
        # TODO(synk): out-of-range token ids silently give a zero embedding
        # (nn.Embedding would raise).
        idx = tok_ref[0]                                        # (B, 1) int32
        onehot = (jax.lax.broadcasted_iota(jnp.int32, (B, V), 1) == idx
                  ).astype(jnp.float32)                         # (B, V)
        emb = dot(onehot, w_ref[0:V, c_emb:c_emb + H])          # (B, H)

        # --- attn_weights = softmax(attn(cat(emb, h2))); padded lanes get a
        #     -1e30 bias so their softmax weight is exactly 0 ---
        att = (dot(jnp.concatenate([emb, h2], axis=1),
                   w_ref[0:twoH, c_attn:w_cols])
               + b_ref[:, c_attn:w_cols])                       # (B, w_cols-c_attn)
        att = att - jnp.max(att, axis=1, keepdims=True)
        att_e = jnp.exp(att)
        attn_w = att_e / jnp.sum(att_e, axis=1, keepdims=True)

        # --- attn_applied = sum_l attn_w[:, l] * enc[l] : VPU weighted sum with
        #     a pairwise tree reduction (dependent-add chain L -> ceil(log2 L)) ---
        terms = [attn_w[:, l:l + 1] * enc_ref[l] for l in range(L)]
        while len(terms) > 1:
            nxt = [terms[i] + terms[i + 1] for i in range(0, len(terms) - 1, 2)]
            if len(terms) % 2:
                nxt.append(terms[-1])
            terms = nxt
        attn_applied = terms[0]                                 # (B, H)

        # --- attn_combine(cat(emb, attn_applied)) + SELU ---
        comb = (dot(jnp.concatenate([emb, attn_applied], axis=1),
                    w_ref[0:twoH, c_comb:c_comb + H])
                + b_ref[:, c_comb:c_comb + H])                  # (B, H)
        neg = SELU_ALPHA * _expm1_neg(jnp.minimum(comb, 0.0))
        x = SELU_SCALE * jnp.where(comb > 0, comb, neg)

        # --- two stacked GRU cells, ONE matmul each ---
        def gru(xx, hh, w, bb):
            g = dot(jnp.concatenate([xx, hh], axis=1), w) + bb  # (B, 4H)
            r = jax.nn.sigmoid(g[:, 0:H])
            z = jax.nn.sigmoid(g[:, H:2 * H])
            n = jnp.tanh(g[:, 2 * H:3 * H] + r * g[:, 3 * H:4 * H])
            return (1.0 - z) * n + z * hh

        h1_new = gru(x, h1, w_ref[0:twoH, c_g1:c_g1 + 4 * H],
                     b_ref[:, c_g1:c_g1 + 4 * H])
        h2_new = gru(h1_new, h2, w_ref[0:twoH, c_g2:c_g2 + 4 * H],
                     b_ref[:, c_g2:c_g2 + 4 * H])

        # --- out projection + LogSoftmax (out weight rows 0:H are zero, so the
        #     packed [h1_new | h2_new] doubles as the matmul LHS) ---
        hcat = jnp.concatenate([h1_new, h2_new], axis=1)        # (B, 2H)
        logits = dot(hcat, w_ref[0:twoH, c_out:c_out + V]) + b_ref[:, c_out:c_out + V]
        shifted = logits - jnp.max(logits, axis=1, keepdims=True)
        logp = shifted - jnp.log(jnp.sum(jnp.exp(shifted), axis=1, keepdims=True))

        # --- carry hidden state; emit one lane-dense packed row per step ---
        h1_s[...] = h1_new
        h2_s[...] = h2_new
        out_ref[0] = jnp.concatenate([hcat, logp], axis=1)      # (B, 2H + V)

    return kernel


def decoder_decode(w_all, b_all, voc_size, tokens, hidden1, hidden2, encoder_outputs):
    """Run T teacher-forced decode steps fused into one pallas_call.

    tokens: (T, B) int ids; hidden1/hidden2: (1, B, H); encoder_outputs: (L, B, H).
    Returns (logp (T, B, V), hidden1' (1, B, H), hidden2' (1, B, H)).
    T=1 reproduces DecoderRNN.forward exactly.
    """
    T, B = tokens.shape
    H = hidden1.shape[2]
    L = encoder_outputs.shape[0]
    V = voc_size
    P = 2 * H + V                                   # packed output width (=128 here)
    *_, w_cols, rows = _col_layout(H, V, L)
    assert w_all.shape == (rows, w_cols) and b_all.shape == (1, w_cols)

    tok3 = tokens.astype(jnp.int32)[:, :, None]     # (T, B, 1)
    h1 = hidden1[0]                                 # (B, H)
    h2 = hidden2[0]                                 # (B, H)

    kernel = _make_decoder_kernel(B, H, V, L, w_cols)

    grid_spec = pltpu.PrefetchScalarGridSpec(
        num_scalar_prefetch=0,
        grid=(T,),
        in_specs=[
            pl.BlockSpec((1, B, 1), lambda t: (t, 0, 0)),       # step-t token ids
            pl.BlockSpec((B, H), lambda t: (0, 0)),             # h1_0 (resident)
            pl.BlockSpec((B, H), lambda t: (0, 0)),             # h2_0 (resident)
            pl.BlockSpec((L, B, H), lambda t: (0, 0, 0)),       # encoder outputs (resident)
            pl.BlockSpec((rows, w_cols), lambda t: (0, 0)),     # packed weights (resident)
            pl.BlockSpec((1, w_cols), lambda t: (0, 0)),        # packed biases (resident)
        ],
        out_specs=pl.BlockSpec((1, B, P), lambda t: (t, 0, 0)), # lane-dense packed row
        scratch_shapes=[pltpu.VMEM((B, H), jnp.float32),        # h1 carry
                        pltpu.VMEM((B, H), jnp.float32)],       # h2 carry
    )

    packed = pl.pallas_call(
        kernel,
        out_shape=jax.ShapeDtypeStruct((T, B, P), jnp.float32),
        grid_spec=grid_spec,
        compiler_params=pltpu.CompilerParams(
            dimension_semantics=("arbitrary",)),                # recurrence over steps
    )(tok3, h1, h2, encoder_outputs, w_all, b_all)

    logp = packed[:, :, 2 * H:]                     # (T, B, V)
    h1_final = packed[-1, :, 0:H][None]             # (1, B, H)
    h2_final = packed[-1, :, H:2 * H][None]         # (1, B, H)
    return logp, h1_final, h2_final


def decoder_forward(w_all, b_all, voc_size, inp, hidden1, hidden2, encoder_outputs):
    """Mirror of DecoderRNN.forward(input, hidden1, hidden2, encoder_outputs)."""
    logp, h1n, h2n = decoder_decode(w_all, b_all, voc_size, inp,
                                    hidden1, hidden2, encoder_outputs)
    return logp[0], h1n, h2n


# ----------------------------------------------------------------------------
# Pure-JAX reference (PyTorch semantics) and raw-parameter init.
# ----------------------------------------------------------------------------
def decoder_reference(raw, inp, hidden1, hidden2, encoder_outputs):
    """Single decode step, pure JAX, unpacked params."""
    H = hidden1.shape[2]
    emb = raw["emb"][inp[0]]
    h1, h2 = hidden1[0], hidden2[0]

    att = jnp.concatenate([emb, h2], axis=1) @ raw["attn_w"] + raw["attn_b"]
    attn_w = jax.nn.softmax(att, axis=1)
    enc = jnp.transpose(encoder_outputs, (1, 0, 2))
    attn_applied = jnp.einsum('bl,blh->bh', attn_w, enc)
    comb = (jnp.concatenate([emb, attn_applied], axis=1) @ raw["comb_w"]
            + raw["comb_b"])
    x = SELU_SCALE * jnp.where(comb > 0, comb,
                               SELU_ALPHA * jnp.expm1(jnp.minimum(comb, 0.0)))

    def gru(xx, hh, wi, wh, bi, bh):
        gi = xx @ wi + bi
        gh = hh @ wh + bh
        r = jax.nn.sigmoid(gi[:, :H] + gh[:, :H])
        z = jax.nn.sigmoid(gi[:, H:2 * H] + gh[:, H:2 * H])
        n = jnp.tanh(gi[:, 2 * H:] + r * gh[:, 2 * H:])
        return (1.0 - z) * n + z * hh

    h1n = gru(x, h1, raw["g1_wi"], raw["g1_wh"], raw["g1_bi"], raw["g1_bh"])
    h2n = gru(h1n, h2, raw["g2_wi"], raw["g2_wh"], raw["g2_bi"], raw["g2_bh"])
    logits = h2n @ raw["out_w"] + raw["out_b"]
    return jax.nn.log_softmax(logits, axis=1), h1n[None], h2n[None]


def decoder_reference_decode(raw, tokens, hidden1, hidden2, encoder_outputs):
    logps, h1, h2 = [], hidden1, hidden2
    for t in range(tokens.shape[0]):
        lp, h1, h2 = decoder_reference(raw, tokens[t:t + 1], h1, h2, encoder_outputs)
        logps.append(lp)
    return jnp.stack(logps, axis=0), h1, h2


def init_params(key, hidden_size, voc_size, max_length):
    H, V, L = hidden_size, voc_size, max_length
    ks = jax.random.split(key, 16)
    s_h = 1.0 / np.sqrt(H)
    s_2h = 1.0 / np.sqrt(2 * H)
    f32 = jnp.float32
    # TODO(synk): self.optimizer = optim.Adam(...) is training-only state; not part of forward.
    return {
        "emb": jax.random.normal(ks[0], (V, H), f32),
        "attn_w": jax.random.normal(ks[1], (2 * H, L), f32) * s_2h,
        "attn_b": jax.random.normal(ks[2], (1, L), f32) * s_2h,
        "comb_w": jax.random.normal(ks[3], (2 * H, H), f32) * s_2h,
        "comb_b": jax.random.normal(ks[4], (1, H), f32) * s_2h,
        "g1_wi": jax.random.normal(ks[5], (H, 3 * H), f32) * s_h,
        "g1_wh": jax.random.normal(ks[6], (H, 3 * H), f32) * s_h,
        "g1_bi": jax.random.normal(ks[7], (1, 3 * H), f32) * s_h,
        "g1_bh": jax.random.normal(ks[8], (1, 3 * H), f32) * s_h,
        "g2_wi": jax.random.normal(ks[9], (H, 3 * H), f32) * s_h,
        "g2_wh": jax.random.normal(ks[10], (H, 3 * H), f32) * s_h,
        "g2_bi": jax.random.normal(ks[11], (1, 3 * H), f32) * s_h,
        "g2_bh": jax.random.normal(ks[12], (1, 3 * H), f32) * s_h,
        "out_w": jax.random.normal(ks[13], (H, V), f32) * s_h,
        "out_b": jax.random.normal(ks[14], (1, V), f32) * s_h,
    }


if __name__ == "__main__":
    B, H, V, L, T = 8, 32, 64, MAX_LENGTH, 6

    key = jax.random.PRNGKey(0)
    k_par, k_tok, k_h1, k_h2, k_enc = jax.random.split(key, 5)

    raw = init_params(k_par, H, V, L)
    w_all, b_all = pack_params(raw)

    tokens = jax.random.randint(k_tok, (T, B), 0, V, dtype=jnp.int32)
    hidden1 = jax.random.normal(k_h1, (1, B, H), jnp.float32)
    hidden2 = jax.random.normal(k_h2, (1, B, H), jnp.float32)
    encoder_outputs = jax.random.normal(k_enc, (L, B, H), jnp.float32)  # (MAX_LENGTH, B, H)

    decode = jax.jit(decoder_decode, static_argnums=2)

    # --- single step: exact DecoderRNN.forward semantics ---
    logp1, h1a, h2a = decode(w_all, b_all, V, tokens[:1], hidden1, hidden2, encoder_outputs)
    jax.block_until_ready((logp1, h1a, h2a))
    with jax.default_matmul_precision("float32"):
        logp1_r, h1a_r, h2a_r = decoder_reference(raw, tokens[:1], hidden1, hidden2,
                                                  encoder_outputs)
    np.testing.assert_allclose(np.asarray(logp1[0]), np.asarray(logp1_r), rtol=2e-5, atol=2e-5)
    np.testing.assert_allclose(np.asarray(h1a), np.asarray(h1a_r), rtol=2e-5, atol=2e-5)
    np.testing.assert_allclose(np.asarray(h2a), np.asarray(h2a_r), rtol=2e-5, atol=2e-5)

    # --- T teacher-forced steps fused into one pallas_call ---
    logpT, h1b, h2b = decode(w_all, b_all, V, tokens, hidden1, hidden2, encoder_outputs)
    jax.block_until_ready((logpT, h1b, h2b))
    with jax.default_matmul_precision("float32"):
        logpT_r, h1b_r, h2b_r = decoder_reference_decode(raw, tokens, hidden1, hidden2,
                                                         encoder_outputs)
    # slightly looser tolerance: rounding differences compound through the recurrence
    np.testing.assert_allclose(np.asarray(logpT), np.asarray(logpT_r), rtol=1e-4, atol=1e-4)
    np.testing.assert_allclose(np.asarray(h1b), np.asarray(h1b_r), rtol=1e-4, atol=1e-4)
    np.testing.assert_allclose(np.asarray(h2b), np.asarray(h2b_r), rtol=1e-4, atol=1e-4)

    print("KERNEL_OK")
</pallas_src>

<mosaic_0001>
module attributes {stable_mosaic.version = 11 : i64} {
  func.func @kernel(%arg0: i32, %arg1: memref<1x8x1xi32, #tpu.memory_space<vmem>>, %arg2: memref<8x32xf32, #tpu.memory_space<vmem>>, %arg3: memref<8x32xf32, #tpu.memory_space<vmem>>, %arg4: memref<15x8x32xf32, #tpu.memory_space<vmem>>, %arg5: memref<64x512xf32, #tpu.memory_space<vmem>>, %arg6: memref<1x512xf32, #tpu.memory_space<vmem>>, %arg7: memref<1x8x128xf32, #tpu.memory_space<vmem>>, %arg8: memref<8x32xf32, #tpu.memory_space<vmem>>, %arg9: memref<8x32xf32, #tpu.memory_space<vmem>>) attributes {dimension_semantics = [#tpu.dimension_semantics<arbitrary>], iteration_bounds = array<i64: 1>, scalar_prefetch = 0 : i64, scratch_operands = 2 : i64, tpu.core_type = #tpu.core_type<tc>, window_params = [{transform_indices = @transform_0, window_bounds = array<i64: 1, 8, 1>}, {pipeline_mode = #tpu.pipeline_mode<synchronous>, transform_indices = @transform_1, window_bounds = array<i64: 8, 32>}, {pipeline_mode = #tpu.pipeline_mode<synchronous>, transform_indices = @transform_2, window_bounds = array<i64: 8, 32>}, {pipeline_mode = #tpu.pipeline_mode<synchronous>, transform_indices = @transform_3, window_bounds = array<i64: 15, 8, 32>}, {pipeline_mode = #tpu.pipeline_mode<synchronous>, transform_indices = @transform_4, window_bounds = array<i64: 64, 512>}, {pipeline_mode = #tpu.pipeline_mode<synchronous>, transform_indices = @transform_5, window_bounds = array<i64: 1, 512>}, {transform_indices = @transform_6, window_bounds = array<i64: 1, 8, 128>}]} {
    %c0_i32 = arith.constant 0 : i32
    %0 = arith.cmpi eq, %arg0, %c0_i32 : i32
    %1 = arith.extui %0 : i1 to i32
    %c0_i32_0 = arith.constant 0 : i32
    %2 = arith.cmpi ne, %1, %c0_i32_0 : i32
    scf.if %2 {
      %c0_84 = arith.constant 0 : index
      %c0_85 = arith.constant 0 : index
      %219 = vector.load %arg2[%c0_84, %c0_85] : memref<8x32xf32, #tpu.memory_space<vmem>>, vector<8x32xf32>
      %c0_86 = arith.constant 0 : index
      %c0_87 = arith.constant 0 : index
      %220 = vector.load %arg8[%c0_86, %c0_87] : memref<8x32xf32, #tpu.memory_space<vmem>>, vector<8x32xf32>
      tpu.vector_store %arg8[%c0_86, %c0_87], %219 {strides = array<i32>} : memref<8x32xf32, #tpu.memory_space<vmem>>, vector<8x32xf32>,
      %c0_88 = arith.constant 0 : index
      %c0_89 = arith.constant 0 : index
      %221 = vector.load %arg3[%c0_88, %c0_89] : memref<8x32xf32, #tpu.memory_space<vmem>>, vector<8x32xf32>
      %c0_90 = arith.constant 0 : index
      %c0_91 = arith.constant 0 : index
      %222 = vector.load %arg9[%c0_90, %c0_91] : memref<8x32xf32, #tpu.memory_space<vmem>>, vector<8x32xf32>
      tpu.vector_store %arg9[%c0_90, %c0_91], %221 {strides = array<i32>} : memref<8x32xf32, #tpu.memory_space<vmem>>, vector<8x32xf32>,
    } else {
    }
    %c0 = arith.constant 0 : index
    %c0_1 = arith.constant 0 : index
    %3 = vector.load %arg8[%c0, %c0_1] : memref<8x32xf32, #tpu.memory_space<vmem>>, vector<8x32xf32>
    %c0_2 = arith.constant 0 : index
    %c0_3 = arith.constant 0 : index
    %4 = vector.load %arg9[%c0_2, %c0_3] : memref<8x32xf32, #tpu.memory_space<vmem>>, vector<8x32xf32>
    %c0_4 = arith.constant 0 : index
    %c0_5 = arith.constant 0 : index
    %c0_6 = arith.constant 0 : index
    %5 = vector.load %arg1[%c0_4, %c0_5, %c0_6] : memref<1x8x1xi32, #tpu.memory_space<vmem>>, vector<1x8x1xi32>
    %6 = vector.shape_cast %5 : vector<1x8x1xi32> to vector<8x1xi32>
    %7 = tpu.iota {dimensions = array<i32: 1>} : vector<8x64xi32>
    %8 = vector.broadcast %6 : vector<8x1xi32> to vector<8x64xi32>
    %9 = arith.cmpi eq, %7, %8 : vector<8x64xi32>
    %10 = arith.extui %9 : vector<8x64xi1> to vector<8x64xi32>
    %11 = arith.sitofp %10 : vector<8x64xi32> to vector<8x64xf32>
    %c0_7 = arith.constant 0 : index
    %c256 = arith.constant 256 : index
    %12 = vector.load %arg5[%c0_7, %c256] : memref<64x512xf32, #tpu.memory_space<vmem>>, vector<64x32xf32>
    %cst = arith.constant dense<0.000000e+00> : vector<8x32xf32>
    %13 = tpu.matmul %11, %12, %cst {dimension_numbers = #tpu.dot_dimension_numbers<[1], [0], [0], [1], [0, 0, 1, 1], [], []>} : vector<8x64xf32>, vector<64x32xf32>, vector<8x32xf32> -> vector<8x32xf32>
    %14 = tpu.concatenate %13, %4 in 1 : vector<8x32xf32>, vector<8x32xf32> -> vector<8x64xf32>
    %c0_8 = arith.constant 0 : index
    %c384 = arith.constant 384 : index
    %15 = vector.load %arg5[%c0_8, %c384] : memref<64x512xf32, #tpu.memory_space<vmem>>, vector<64x128xf32>
    %cst_9 = arith.constant dense<0.000000e+00> : vector<8x128xf32>
    %16 = tpu.matmul %14, %15, %cst_9 {dimension_numbers = #tpu.dot_dimension_numbers<[1], [0], [0], [1], [0, 0, 1, 1], [], []>} : vector<8x64xf32>, vector<64x128xf32>, vector<8x128xf32> -> vector<8x128xf32>
    %c0_10 = arith.constant 0 : index
    %c384_11 = arith.constant 384 : index
    %17 = vector.load %arg6[%c0_10, %c384_11] : memref<1x512xf32, #tpu.memory_space<vmem>>, vector<1x128xf32>
    %18 = vector.broadcast %17 : vector<1x128xf32> to vector<8x128xf32>
    %19 = arith.addf %16, %18 : vector<8x128xf32>
    %cst_12 = arith.constant dense<0xFF800000> : vector<8xf32>
    %20 = vector.multi_reduction <maximumf>, %19, %cst_12 [1] : vector<8x128xf32> to vector<8xf32>
    %21 = vector.shape_cast %20 : vector<8xf32> to vector<8x1xf32>
    %22 = vector.broadcast %21 : vector<8x1xf32> to vector<8x128xf32>
    %23 = arith.subf %19, %22 : vector<8x128xf32>
    %24 = math.exp %23 : vector<8x128xf32>
    %cst_13 = arith.constant dense<0.000000e+00> : vector<8xf32>
    %25 = vector.multi_reduction <add>, %24, %cst_13 [1] : vector<8x128xf32> to vector<8xf32>
    %26 = vector.shape_cast %25 : vector<8xf32> to vector<8x1xf32>
    %27 = vector.broadcast %26 : vector<8x1xf32> to vector<8x128xf32>
    %28 = arith.divf %24, %27 : vector<8x128xf32>
    %29 = vector.extract_strided_slice %28 {offsets = [0, 0], sizes = [8, 1], strides = [1, 1]} : vector<8x128xf32> to vector<8x1xf32>
    %c0_14 = arith.constant 0 : index
    %c0_15 = arith.constant 0 : index
    %c0_16 = arith.constant 0 : index
    %30 = vector.load %arg4[%c0_14, %c0_15, %c0_16] : memref<15x8x32xf32, #tpu.memory_space<vmem>>, vector<1x8x32xf32>
    %31 = vector.shape_cast %30 : vector<1x8x32xf32> to vector<8x32xf32>
    %32 = vector.broadcast %29 : vector<8x1xf32> to vector<8x32xf32>
    %33 = arith.mulf %32, %31 : vector<8x32xf32>
    %34 = vector.extract_strided_slice %28 {offsets = [0, 1], sizes = [8, 1], strides = [1, 1]} : vector<8x128xf32> to vector<8x1xf32>
    %c1 = arith.constant 1 : index
    %c0_17 = arith.constant 0 : index
    %c0_18 = arith.constant 0 : index
    %35 = vector.load %arg4[%c1, %c0_17, %c0_18] : memref<15x8x32xf32, #tpu.memory_space<vmem>>, vector<1x8x32xf32>
    %36 = vector.shape_cast %35 : vector<1x8x32xf32> to vector<8x32xf32>
    %37 = vector.broadcast %34 : vector<8x1xf32> to vector<8x32xf32>
    %38 = arith.mulf %37, %36 : vector<8x32xf32>
    %39 = vector.extract_strided_slice %28 {offsets = [0, 2], sizes = [8, 1], strides = [1, 1]} : vector<8x128xf32> to vector<8x1xf32>
    %c2 = arith.constant 2 : index
    %c0_19 = arith.constant 0 : index
    %c0_20 = arith.constant 0 : index
    %40 = vector.load %arg4[%c2, %c0_19, %c0_20] : memref<15x8x32xf32, #tpu.memory_space<vmem>>, vector<1x8x32xf32>
    %41 = vector.shape_cast %40 : vector<1x8x32xf32> to vector<8x32xf32>
    %42 = vector.broadcast %39 : vector<8x1xf32> to vector<8x32xf32>
    %43 = arith.mulf %42, %41 : vector<8x32xf32>
    %44 = vector.extract_strided_slice %28 {offsets = [0, 3], sizes = [8, 1], strides = [1, 1]} : vector<8x128xf32> to vector<8x1xf32>
    %c3 = arith.constant 3 : index
    %c0_21 = arith.constant 0 : index
    %c0_22 = arith.constant 0 : index
    %45 = vector.load %arg4[%c3, %c0_21, %c0_22] : memref<15x8x32xf32, #tpu.memory_space<vmem>>, vector<1x8x32xf32>
    %46 = vector.shape_cast %45 : vector<1x8x32xf32> to vector<8x32xf32>
    %47 = vector.broadcast %44 : vector<8x1xf32> to vector<8x32xf32>
    %48 = arith.mulf %47, %46 : vector<8x32xf32>
    %49 = vector.extract_strided_slice %28 {offsets = [0, 4], sizes = [8, 1], strides = [1, 1]} : vector<8x128xf32> to vector<8x1xf32>
    %c4 = arith.constant 4 : index
    %c0_23 = arith.constant 0 : index
    %c0_24 = arith.constant 0 : index
    %50 = vector.load %arg4[%c4, %c0_23, %c0_24] : memref<15x8x32xf32, #tpu.memory_space<vmem>>, vector<1x8x32xf32>
    %51 = vector.shape_cast %50 : vector<1x8x32xf32> to vector<8x32xf32>
    %52 = vector.broadcast %49 : vector<8x1xf32> to vector<8x32xf32>
    %53 = arith.mulf %52, %51 : vector<8x32xf32>
    %54 = vector.extract_strided_slice %28 {offsets = [0, 5], sizes = [8, 1], strides = [1, 1]} : vector<8x128xf32> to vector<8x1xf32>
    %c5 = arith.constant 5 : index
    %c0_25 = arith.constant 0 : index
    %c0_26 = arith.constant 0 : index
    %55 = vector.load %arg4[%c5, %c0_25, %c0_26] : memref<15x8x32xf32, #tpu.memory_space<vmem>>, vector<1x8x32xf32>
    %56 = vector.shape_cast %55 : vector<1x8x32xf32> to vector<8x32xf32>
    %57 = vector.broadcast %54 : vector<8x1xf32> to vector<8x32xf32>
    %58 = arith.mulf %57, %56 : vector<8x32xf32>
    %59 = vector.extract_strided_slice %28 {offsets = [0, 6], sizes = [8, 1], strides = [1, 1]} : vector<8x128xf32> to vector<8x1xf32>
    %c6 = arith.constant 6 : index
    %c0_27 = arith.constant 0 : index
    %c0_28 = arith.constant 0 : index
    %60 = vector.load %arg4[%c6, %c0_27, %c0_28] : memref<15x8x32xf32, #tpu.memory_space<vmem>>, vector<1x8x32xf32>
    %61 = vector.shape_cast %60 : vector<1x8x32xf32> to vector<8x32xf32>
    %62 = vector.broadcast %59 : vector<8x1xf32> to vector<8x32xf32>
    %63 = arith.mulf %62, %61 : vector<8x32xf32>
    %64 = vector.extract_strided_slice %28 {offsets = [0, 7], sizes = [8, 1], strides = [1, 1]} : vector<8x128xf32> to vector<8x1xf32>
    %c7 = arith.constant 7 : index
    %c0_29 = arith.constant 0 : index
    %c0_30 = arith.constant 0 : index
    %65 = vector.load %arg4[%c7, %c0_29, %c0_30] : memref<15x8x32xf32, #tpu.memory_space<vmem>>, vector<1x8x32xf32>
    %66 = vector.shape_cast %65 : vector<1x8x32xf32> to vector<8x32xf32>
    %67 = vector.broadcast %64 : vector<8x1xf32> to vector<8x32xf32>
    %68 = arith.mulf %67, %66 : vector<8x32xf32>
    %69 = vector.extract_strided_slice %28 {offsets = [0, 8], sizes = [8, 1], strides = [1, 1]} : vector<8x128xf32> to vector<8x1xf32>
    %c8 = arith.constant 8 : index
    %c0_31 = arith.constant 0 : index
    %c0_32 = arith.constant 0 : index
    %70 = vector.load %arg4[%c8, %c0_31, %c0_32] : memref<15x8x32xf32, #tpu.memory_space<vmem>>, vector<1x8x32xf32>
    %71 = vector.shape_cast %70 : vector<1x8x32xf32> to vector<8x32xf32>
    %72 = vector.broadcast %69 : vector<8x1xf32> to vector<8x32xf32>
    %73 = arith.mulf %72, %71 : vector<8x32xf32>
    %74 = vector.extract_strided_slice %28 {offsets = [0, 9], sizes = [8, 1], strides = [1, 1]} : vector<8x128xf32> to vector<8x1xf32>
    %c9 = arith.constant 9 : index
    %c0_33 = arith.constant 0 : index
    %c0_34 = arith.constant 0 : index
    %75 = vector.load %arg4[%c9, %c0_33, %c0_34] : memref<15x8x32xf32, #tpu.memory_space<vmem>>, vector<1x8x32xf32>
    %76 = vector.shape_cast %75 : vector<1x8x32xf32> to vector<8x32xf32>
    %77 = vector.broadcast %74 : vector<8x1xf32> to vector<8x32xf32>
    %78 = arith.mulf %77, %76 : vector<8x32xf32>
    %79 = vector.extract_strided_slice %28 {offsets = [0, 10], sizes = [8, 1], strides = [1, 1]} : vector<8x128xf32> to vector<8x1xf32>
    %c10 = arith.constant 10 : index
    %c0_35 = arith.constant 0 : index
    %c0_36 = arith.constant 0 : index
    %80 = vector.load %arg4[%c10, %c0_35, %c0_36] : memref<15x8x32xf32, #tpu.memory_space<vmem>>, vector<1x8x32xf32>
    %81 = vector.shape_cast %80 : vector<1x8x32xf32> to vector<8x32xf32>
    %82 = vector.broadcast %79 : vector<8x1xf32> to vector<8x32xf32>
    %83 = arith.mulf %82, %81 : vector<8x32xf32>
    %84 = vector.extract_strided_slice %28 {offsets = [0, 11], sizes = [8, 1], strides = [1, 1]} : vector<8x128xf32> to vector<8x1xf32>
    %c11 = arith.constant 11 : index
    %c0_37 = arith.constant 0 : index
    %c0_38 = arith.constant 0 : index
    %85 = vector.load %arg4[%c11, %c0_37, %c0_38] : memref<15x8x32xf32, #tpu.memory_space<vmem>>, vector<1x8x32xf32>
    %86 = vector.shape_cast %85 : vector<1x8x32xf32> to vector<8x32xf32>
    %87 = vector.broadcast %84 : vector<8x1xf32> to vector<8x32xf32>
    %88 = arith.mulf %87, %86 : vector<8x32xf32>
    %89 = vector.extract_strided_slice %28 {offsets = [0, 12], sizes = [8, 1], strides = [1, 1]} : vector<8x128xf32> to vector<8x1xf32>
    %c12 = arith.constant 12 : index
    %c0_39 = arith.constant 0 : index
    %c0_40 = arith.constant 0 : index
    %90 = vector.load %arg4[%c12, %c0_39, %c0_40] : memref<15x8x32xf32, #tpu.memory_space<vmem>>, vector<1x8x32xf32>
    %91 = vector.shape_cast %90 : vector<1x8x32xf32> to vector<8x32xf32>
    %92 = vector.broadcast %89 : vector<8x1xf32> to vector<8x32xf32>
    %93 = arith.mulf %92, %91 : vector<8x32xf32>
    %94 = vector.extract_strided_slice %28 {offsets = [0, 13], sizes = [8, 1], strides = [1, 1]} : vector<8x128xf32> to vector<8x1xf32>
    %c13 = arith.constant 13 : index
    %c0_41 = arith.constant 0 : index
    %c0_42 = arith.constant 0 : index
    %95 = vector.load %arg4[%c13, %c0_41, %c0_42] : memref<15x8x32xf32, #tpu.memory_space<vmem>>, vector<1x8x32xf32>
    %96 = vector.shape_cast %95 : vector<1x8x32xf32> to vector<8x32xf32>
    %97 = vector.broadcast %94 : vector<8x1xf32> to vector<8x32xf32>
    %98 = arith.mulf %97, %96 : vector<8x32xf32>
    %99 = vector.extract_strided_slice %28 {offsets = [0, 14], sizes = [8, 1], strides = [1, 1]} : vector<8x128xf32> to vector<8x1xf32>
    %c14 = arith.constant 14 : index
    %c0_43 = arith.constant 0 : index
    %c0_44 = arith.constant 0 : index
    %100 = vector.load %arg4[%c14, %c0_43, %c0_44] : memref<15x8x32xf32, #tpu.memory_space<vmem>>, vector<1x8x32xf32>
    %101 = vector.shape_cast %100 : vector<1x8x32xf32> to vector<8x32xf32>
    %102 = vector.broadcast %99 : vector<8x1xf32> to vector<8x32xf32>
    %103 = arith.mulf %102, %101 : vector<8x32xf32>
    %104 = arith.addf %33, %38 : vector<8x32xf32>
    %105 = arith.addf %43, %48 : vector<8x32xf32>
    %106 = arith.addf %53, %58 : vector<8x32xf32>
    %107 = arith.addf %63, %68 : vector<8x32xf32>
    %108 = arith.addf %73, %78 : vector<8x32xf32>
    %109 = arith.addf %83, %88 : vector<8x32xf32>
    %110 = arith.addf %93, %98 : vector<8x32xf32>
    %111 = arith.addf %104, %105 : vector<8x32xf32>
    %112 = arith.addf %106, %107 : vector<8x32xf32>
    %113 = arith.addf %108, %109 : vector<8x32xf32>
    %114 = arith.addf %110, %103 : vector<8x32xf32>
    %115 = arith.addf %111, %112 : vector<8x32xf32>
    %116 = arith.addf %113, %114 : vector<8x32xf32>
    %117 = arith.addf %115, %116 : vector<8x32xf32>
    %118 = tpu.concatenate %13, %117 in 1 : vector<8x32xf32>, vector<8x32xf32> -> vector<8x64xf32>
    %c0_45 = arith.constant 0 : index
    %c288 = arith.constant 288 : index
    %119 = vector.load %arg5[%c0_45, %c288] : memref<64x512xf32, #tpu.memory_space<vmem>>, vector<64x32xf32>
    %cst_46 = arith.constant dense<0.000000e+00> : vector<8x32xf32>
    %120 = tpu.matmul %118, %119, %cst_46 {dimension_numbers = #tpu.dot_dimension_numbers<[1], [0], [0], [1], [0, 0, 1, 1], [], []>} : vector<8x64xf32>, vector<64x32xf32>, vector<8x32xf32> -> vector<8x32xf32>
    %c0_47 = arith.constant 0 : index
    %c288_48 = arith.constant 288 : index
    %121 = vector.load %arg6[%c0_47, %c288_48] : memref<1x512xf32, #tpu.memory_space<vmem>>, vector<1x32xf32>
    %122 = vector.broadcast %121 : vector<1x32xf32> to vector<8x32xf32>
    %123 = arith.addf %120, %122 : vector<8x32xf32>
    %cst_49 = arith.constant 0.000000e+00 : f32
    %124 = vector.broadcast %cst_49 : f32 to vector<8x32xf32>
    %125 = arith.minimumf %123, %124 : vector<8x32xf32>
    %cst_50 = arith.constant 5.000000e-01 : f32
    %126 = vector.broadcast %cst_50 : f32 to vector<8x32xf32>
    %127 = arith.mulf %126, %125 : vector<8x32xf32>
    %128 = math.tanh %127 : vector<8x32xf32>
    %cst_51 = arith.constant 2.000000e+00 : f32
    %129 = vector.broadcast %cst_51 : f32 to vector<8x32xf32>
    %130 = arith.mulf %129, %128 : vector<8x32xf32>
    %cst_52 = arith.constant 1.000000e+00 : f32
    %131 = vector.broadcast %cst_52 : f32 to vector<8x32xf32>
    %132 = arith.subf %131, %128 : vector<8x32xf32>
    %133 = arith.divf %130, %132 : vector<8x32xf32>
    %cst_53 = arith.constant 1.67326319 : f32
    %134 = vector.broadcast %cst_53 : f32 to vector<8x32xf32>
    %135 = arith.mulf %134, %133 : vector<8x32xf32>
    %cst_54 = arith.constant 0.000000e+00 : f32
    %136 = vector.broadcast %cst_54 : f32 to vector<8x32xf32>
    %137 = arith.cmpf ogt, %123, %136 : vector<8x32xf32>
    %138 = arith.select %137, %123, %135 : vector<8x32xi1>, vector<8x32xf32>
    %cst_55 = arith.constant 1.05070102 : f32
    %139 = vector.broadcast %cst_55 : f32 to vector<8x32xf32>
    %140 = arith.mulf %139, %138 : vector<8x32xf32>
    %c0_56 = arith.constant 0 : index
    %c0_57 = arith.constant 0 : index
    %141 = vector.load %arg5[%c0_56, %c0_57] : memref<64x512xf32, #tpu.memory_space<vmem>>, vector<64x128xf32>
    %c0_58 = arith.constant 0 : index
    %c0_59 = arith.constant 0 : index
    %142 = vector.load %arg6[%c0_58, %c0_59] : memref<1x512xf32, #tpu.memory_space<vmem>>, vector<1x128xf32>
    %143 = tpu.concatenate %140, %3 in 1 : vector<8x32xf32>, vector<8x32xf32> -> vector<8x64xf32>
    %cst_60 = arith.constant dense<0.000000e+00> : vector<8x128xf32>
    %144 = tpu.matmul %143, %141, %cst_60 {dimension_numbers = #tpu.dot_dimension_numbers<[1], [0], [0], [1], [0, 0, 1, 1], [], []>} : vector<8x64xf32>, vector<64x128xf32>, vector<8x128xf32> -> vector<8x128xf32>
    %145 = vector.broadcast %142 : vector<1x128xf32> to vector<8x128xf32>
    %146 = arith.addf %144, %145 : vector<8x128xf32>
    %147 = vector.extract_strided_slice %146 {offsets = [0, 0], sizes = [8, 32], strides = [1, 1]} : vector<8x128xf32> to vector<8x32xf32>
    %148 = arith.negf %147 : vector<8x32xf32>
    %149 = math.exp %148 : vector<8x32xf32>
    %cst_61 = arith.constant 1.000000e+00 : f32
    %150 = vector.broadcast %cst_61 : f32 to vector<8x32xf32>
    %151 = arith.addf %150, %149 : vector<8x32xf32>
    %152 = arith.divf %150, %151 : vector<8x32xf32>
    %153 = vector.extract_strided_slice %146 {offsets = [0, 32], sizes = [8, 32], strides = [1, 1]} : vector<8x128xf32> to vector<8x32xf32>
    %154 = arith.negf %153 : vector<8x32xf32>
    %155 = math.exp %154 : vector<8x32xf32>
    %cst_62 = arith.constant 1.000000e+00 : f32
    %156 = vector.broadcast %cst_62 : f32 to vector<8x32xf32>
    %157 = arith.addf %156, %155 : vector<8x32xf32>
    %158 = arith.divf %156, %157 : vector<8x32xf32>
    %159 = vector.extract_strided_slice %146 {offsets = [0, 64], sizes = [8, 32], strides = [1, 1]} : vector<8x128xf32> to vector<8x32xf32>
    %160 = vector.extract_strided_slice %146 {offsets = [0, 96], sizes = [8, 32], strides = [1, 1]} : vector<8x128xf32> to vector<8x32xf32>
    %161 = arith.mulf %152, %160 : vector<8x32xf32>
    %162 = arith.addf %159, %161 : vector<8x32xf32>
    %163 = math.tanh %162 : vector<8x32xf32>
    %cst_63 = arith.constant 1.000000e+00 : f32
    %164 = vector.broadcast %cst_63 : f32 to vector<8x32xf32>
    %165 = arith.subf %164, %158 : vector<8x32xf32>
    %166 = arith.mulf %165, %163 : vector<8x32xf32>
    %167 = arith.mulf %158, %3 : vector<8x32xf32>
    %168 = arith.addf %166, %167 : vector<8x32xf32>
    %c0_64 = arith.constant 0 : index
    %c128 = arith.constant 128 : index
    %169 = vector.load %arg5[%c0_64, %c128] : memref<64x512xf32, #tpu.memory_space<vmem>>, vector<64x128xf32>
    %c0_65 = arith.constant 0 : index
    %c128_66 = arith.constant 128 : index
    %170 = vector.load %arg6[%c0_65, %c128_66] : memref<1x512xf32, #tpu.memory_space<vmem>>, vector<1x128xf32>
    %171 = tpu.concatenate %168, %4 in 1 : vector<8x32xf32>, vector<8x32xf32> -> vector<8x64xf32>
    %cst_67 = arith.constant dense<0.000000e+00> : vector<8x128xf32>
    %172 = tpu.matmul %171, %169, %cst_67 {dimension_numbers = #tpu.dot_dimension_numbers<[1], [0], [0], [1], [0, 0, 1, 1], [], []>} : vector<8x64xf32>, vector<64x128xf32>, vector<8x128xf32> -> vector<8x128xf32>
    %173 = vector.broadcast %170 : vector<1x128xf32> to vector<8x128xf32>
    %174 = arith.addf %172, %173 : vector<8x128xf32>
    %175 = vector.extract_strided_slice %174 {offsets = [0, 0], sizes = [8, 32], strides = [1, 1]} : vector<8x128xf32> to vector<8x32xf32>
    %176 = arith.negf %175 : vector<8x32xf32>
    %177 = math.exp %176 : vector<8x32xf32>
    %cst_68 = arith.constant 1.000000e+00 : f32
    %178 = vector.broadcast %cst_68 : f32 to vector<8x32xf32>
    %179 = arith.addf %178, %177 : vector<8x32xf32>
    %180 = arith.divf %178, %179 : vector<8x32xf32>
    %181 = vector.extract_strided_slice %174 {offsets = [0, 32], sizes = [8, 32], strides = [1, 1]} : vector<8x128xf32> to vector<8x32xf32>
    %182 = arith.negf %181 : vector<8x32xf32>
    %183 = math.exp %182 : vector<8x32xf32>
    %cst_69 = arith.constant 1.000000e+00 : f32
    %184 = vector.broadcast %cst_69 : f32 to vector<8x32xf32>
    %185 = arith.addf %184, %183 : vector<8x32xf32>
    %186 = arith.divf %184, %185 : vector<8x32xf32>
    %187 = vector.extract_strided_slice %174 {offsets = [0, 64], sizes = [8, 32], strides = [1, 1]} : vector<8x128xf32> to vector<8x32xf32>
    %188 = vector.extract_strided_slice %174 {offsets = [0, 96], sizes = [8, 32], strides = [1, 1]} : vector<8x128xf32> to vector<8x32xf32>
    %189 = arith.mulf %180, %188 : vector<8x32xf32>
    %190 = arith.addf %187, %189 : vector<8x32xf32>
    %191 = math.tanh %190 : vector<8x32xf32>
    %cst_70 = arith.constant 1.000000e+00 : f32
    %192 = vector.broadcast %cst_70 : f32 to vector<8x32xf32>
    %193 = arith.subf %192, %186 : vector<8x32xf32>
    %194 = arith.mulf %193, %191 : vector<8x32xf32>
    %195 = arith.mulf %186, %4 : vector<8x32xf32>
    %196 = arith.addf %194, %195 : vector<8x32xf32>
    %197 = tpu.concatenate %168, %196 in 1 : vector<8x32xf32>, vector<8x32xf32> -> vector<8x64xf32>
    %c0_71 = arith.constant 0 : index
    %c320 = arith.constant 320 : index
    %198 = vector.load %arg5[%c0_71, %c320] : memref<64x512xf32, #tpu.memory_space<vmem>>, vector<64x64xf32>
    %cst_72 = arith.constant dense<0.000000e+00> : vector<8x64xf32>
    %199 = tpu.matmul %197, %198, %cst_72 {dimension_numbers = #tpu.dot_dimension_numbers<[1], [0], [0], [1], [0, 0, 1, 1], [], []>} : vector<8x64xf32>, vector<64x64xf32>, vector<8x64xf32> -> vector<8x64xf32>
    %c0_73 = arith.constant 0 : index
    %c320_74 = arith.constant 320 : index
    %200 = vector.load %arg6[%c0_73, %c320_74] : memref<1x512xf32, #tpu.memory_space<vmem>>, vector<1x64xf32>
    %201 = vector.broadcast %200 : vector<1x64xf32> to vector<8x64xf32>
    %202 = arith.addf %199, %201 : vector<8x64xf32>
    %cst_75 = arith.constant dense<0xFF800000> : vector<8xf32>
    %203 = vector.multi_reduction <maximumf>, %202, %cst_75 [1] : vector<8x64xf32> to vector<8xf32>
    %204 = vector.shape_cast %203 : vector<8xf32> to vector<8x1xf32>
    %205 = vector.broadcast %204 : vector<8x1xf32> to vector<8x64xf32>
    %206 = arith.subf %202, %205 : vector<8x64xf32>
    %207 = math.exp %206 : vector<8x64xf32>
    %cst_76 = arith.constant dense<0.000000e+00> : vector<8xf32>
    %208 = vector.multi_reduction <add>, %207, %cst_76 [1] : vector<8x64xf32> to vector<8xf32>
    %209 = vector.shape_cast %208 : vector<8xf32> to vector<8x1xf32>
    %210 = math.log %209 : vector<8x1xf32>
    %211 = vector.broadcast %210 : vector<8x1xf32> to vector<8x64xf32>
    %212 = arith.subf %206, %211 : vector<8x64xf32>
    %c0_77 = arith.constant 0 : index
    %c0_78 = arith.constant 0 : index
    %213 = vector.load %arg8[%c0_77, %c0_78] : memref<8x32xf32, #tpu.memory_space<vmem>>, vector<8x32xf32>
    tpu.vector_store %arg8[%c0_77, %c0_78], %168 {strides = array<i32>} : memref<8x32xf32, #tpu.memory_space<vmem>>, vector<8x32xf32>,
    %c0_79 = arith.constant 0 : index
    %c0_80 = arith.constant 0 : index
    %214 = vector.load %arg9[%c0_79, %c0_80] : memref<8x32xf32, #tpu.memory_space<vmem>>, vector<8x32xf32>
    tpu.vector_store %arg9[%c0_79, %c0_80], %196 {strides = array<i32>} : memref<8x32xf32, #tpu.memory_space<vmem>>, vector<8x32xf32>,
    %215 = tpu.concatenate %197, %212 in 1 : vector<8x64xf32>, vector<8x64xf32> -> vector<8x128xf32>
    %c0_81 = arith.constant 0 : index
    %c0_82 = arith.constant 0 : index
    %c0_83 = arith.constant 0 : index
    %216 = vector.load %arg7[%c0_81, %c0_82, %c0_83] : memref<1x8x128xf32, #tpu.memory_space<vmem>>, vector<1x8x128xf32>
    %217 = vector.shape_cast %216 : vector<1x8x128xf32> to vector<8x128xf32>
    %218 = vector.shape_cast %215 : vector<8x128xf32> to vector<1x8x128xf32>
    tpu.vector_store %arg7[%c0_81, %c0_82, %c0_83], %218 {strides = array<i32>} : memref<1x8x128xf32, #tpu.memory_space<vmem>>, vector<1x8x128xf32>,
    return
  }
  func.func @transform_0(%arg0: i32) -> (i32, i32, i32) {
    %c0_i32 = arith.constant 0 : i32
    %c0_i32_0 = arith.constant 0 : i32
    %c0_i32_1 = arith.constant 0 : i32
    return %arg0, %c0_i32, %c0_i32_0 : i32, i32, i32
  }
  func.func @transform_1(%arg0: i32) -> (i32, i32) {
    %c0_i32 = arith.constant 0 : i32
    %c0_i32_0 = arith.constant 0 : i32
    %c0_i32_1 = arith.constant 0 : i32
    return %c0_i32, %c0_i32_0 : i32, i32
  }
  func.func @transform_2(%arg0: i32) -> (i32, i32) {
    %c0_i32 = arith.constant 0 : i32
    %c0_i32_0 = arith.constant 0 : i32
    %c0_i32_1 = arith.constant 0 : i32
    return %c0_i32, %c0_i32_0 : i32, i32
  }
  func.func @transform_3(%arg0: i32) -> (i32, i32, i32) {
    %c0_i32 = arith.constant 0 : i32
    %c0_i32_0 = arith.constant 0 : i32
    %c0_i32_1 = arith.constant 0 : i32
    %c0_i32_2 = arith.constant 0 : i32
    return %c0_i32, %c0_i32_0, %c0_i32_1 : i32, i32, i32
  }
  func.func @transform_4(%arg0: i32) -> (i32, i32) {
    %c0_i32 = arith.constant 0 : i32
    %c0_i32_0 = arith.constant 0 : i32
    %c0_i32_1 = arith.constant 0 : i32
    return %c0_i32, %c0_i32_0 : i32, i32
  }
  func.func @transform_5(%arg0: i32) -> (i32, i32) {
    %c0_i32 = arith.constant 0 : i32
    %c0_i32_0 = arith.constant 0 : i32
    %c0_i32_1 = arith.constant 0 : i32
    return %c0_i32, %c0_i32_0 : i32, i32
  }
  func.func @transform_6(%arg0: i32) -> (i32, i32, i32) {
    %c0_i32 = arith.constant 0 : i32
    %c0_i32_0 = arith.constant 0 : i32
    %c0_i32_1 = arith.constant 0 : i32
    return %arg0, %c0_i32, %c0_i32_0 : i32, i32, i32
  }
}

</mosaic_0001>

<bundles_post_ra>
// kernel: decoder_decode.1
= control target key start
LH: loop header
LB: loop body
LE: loop exit
PB: predicated region body
PF: predicated region fallthrough
CT: control target
= control target key end

     0   :  { %11 = vsyncpa [#allocation5], 0  ;;  %s1055_s0 = inlined_call_operand.vmem [shape: s32[1,8,1], index: 0, kind: input, shape index: {}]   ;;  %s1056_s1 = inlined_call_operand.vmem [shape: f32[8,32], index: 1, kind: input, shape index: {}]   ;;  %s1057_s2 = inlined_call_operand.hbm [shape: f32[8,32], index: 2, kind: input, shape index: {}]   ;;  %s1058_s3 = inlined_call_operand.hbm [shape: f32[15,8,32], index: 3, kind: input, shape index: {}]   ;;  %s1059_s4 = inlined_call_operand.hbm [shape: f32[64,512], index: 4, kind: input, shape index: {}]   ;;  %s1060_s5 = inlined_call_operand.hbm [shape: f32[1,512], index: 5, kind: input, shape index: {}]   ;;  %s1061_s6 = inlined_call_operand.vmem [shape: f32[1,8,128], index: 6, kind: output, shape index: {}]  }
   0x1   :  { %12 = vsyncpa [#allocation7], 0  ;;  %s33_s23 = sshll.u32 %s1058_s3, 4  ;;  %s34_s23 = int_to_ptr.hbm [resolvable:$true] %s33_s23 }
   0x2   :  { %13 = vsyncpa [#allocation10], 0  ;;  %s866_s24 = smov [#allocation6]   ;;  %s23_s28 = sshll.u32 %s1057_s2, 4  ;;  %s24_s28 = int_to_ptr.hbm [resolvable:$true] %s23_s28 }
   0x3   :  { %s35_s25 = sshll.u32 %s866_s24, 4  ;;  %s867_s29 = smov 128   ;;  %s36_s25 = int_to_ptr.vmem [resolvable:$true] %s35_s25 }
   0x4   :  { %s868_s30 = smov 8   ;;  %s869_s7 = smov [#allocation4]  }
   0x5   :  { %41 = dma.hbm_to_vmem [thread:$0]  %s34_s23, 1920, %s36_s25, [#allocation7], %s867_s29, %s867_s29, %s868_s30  }
   0x6   :  { %s25_s8 = sshll.u32 %s869_s7, 4  ;;  %s46_s11 = sshll.u32 %s1059_s4, 4  ;;  %s26_s8 = int_to_ptr.vmem [resolvable:$true] %s25_s8  ;;  %s47_s11 = int_to_ptr.hbm [resolvable:$true] %s46_s11 }
   0x7   :  { %28 = dma.hbm_to_vmem [thread:$0]  %s24_s28, 128, %s26_s8, [#allocation5]  }
   0x8   :  { %s870_s3 = smov [#allocation8]   ;;  %s60_s2 = sshll.u32 %s1060_s5, 4  ;;  %s61_s2 = int_to_ptr.hbm [resolvable:$true] %s60_s2 }
   0x9   :  { %s48_s12 = sshll.u32 %s870_s3, 4  ;;  %s871_s15 = smov 512   ;;  %s49_s12 = int_to_ptr.vmem [resolvable:$true] %s48_s12 }
   0xa   :  { %s872_s16 = smov 32   ;;  %s873_s17 = smov [#allocation9]  }
   0xb   :  { %54 = dma.hbm_to_vmem [thread:$0]  %s47_s11, 4096, %s49_s12, [#allocation7], %s871_s15, %s871_s15, %s872_s16  }
   0xc   :  { %s62_s18 = sshll.u32 %s873_s17, 4  ;;  %s63_s18 = int_to_ptr.vmem [resolvable:$true] %s62_s18 }
   0xd   :  { %65 = dma.hbm_to_vmem [thread:$0]  %s61_s2, 64, %s63_s18, [#allocation10]  }
   0xe   :  { %860 = dma.done.wait [#allocation5], 128  }
   0xf   :  { %861 = vsyncadd [#allocation5], 4294967168 }
  0x10   :  { %862 = dma.done.wait [#allocation7], 6016  }
  0x11   :  { %863 = vsyncadd [#allocation7], 4294961280 }
  0x12   :  { %864 = dma.done.wait [#allocation10], 64  }
  0x13   :  { %865 = vsyncadd [#allocation10], 4294967232  ;;  %v874_v0 = vmov 0   ;;  %v93_v1 = vld [vmem:[%s1055_s0] sm:$0xff]  ;;  %vm87_vm0 = vcmask 261120   ;;  %v89_v10 = vld [vmem:[#allocation4] sm:$0xff]  ;;  %v94_v19 = vlaneseq }
  0x14   :  { %679 = vset.pattern.permute.xlu0 %v874_v0  ;;  %680 = vset.pattern.permute.xlu2 %v874_v0  ;;  %v943_v2 = vld [vmem:[#allocation8 + $0xf0] sm:$0xff]  ;;  %v147_v11 = vld [vmem:[#allocation8 + $0xf8] sm:$0xff]  ;;  %90 = vst.msk [vmem:[#allocation3] sm:$0xff] %vm87_vm0, %v89_v10  ;;  %vm110_vm1 = vcmask 523264   ;;  %v875_v22 = vmov 0.0   ;;  %v876_v35 = vmov 3  }
  0x15   :  { %v945_v3 = vld [vmem:[#allocation8 + $0xd0] sm:$0xff]  ;;  %97 = vperm.xlu0 %679, %v93_v1   ;;  %122 = vmatpush.msra.mxu0 %v943_v2  ;;  %v146_v12 = vld [vmem:[#allocation8 + $0xd8] sm:$0xff]  ;;  %v95_v20 = vand.u32 127, %v94_v19  ;;  %v736_v28 = vld [vmem:[#allocation9 + $0x3] ss:$0 sm:$0xff]  ;;  %v877_v36 = vmov 2  }
  0x16   :  { %v948_v4 = vld [vmem:[#allocation8 + $0xb0] sm:$0xff]  ;;  %163 = vmatpush.msra.mxu1 %v147_v11  ;;  %v145_v13 = vld [vmem:[#allocation8 + $0xb8] sm:$0xff]  ;;  %683 = vset.pattern.permute.xlu1 %v876_v35  ;;  %v878_v49 = vmov 9   ;;  %v879_v50 = vmov 6   ;;  %v880_v51 = vmov 1   ;;  %v881_v52 = vmov 12  }
  0x17   :  { %123 = vmatpush.msra.mxu0 %v945_v3  ;;  %v951_v5 = vld [vmem:[#allocation8 + $0x90] sm:$0xff]  ;;  %v144_v14 = vld [vmem:[#allocation8 + $0x98] sm:$0xff]  ;;  %v882_v53 = vmov 10   ;;  %v883_v54 = vmov 4   ;;  %v884_v55 = vmov 14   ;;  %v885_v56 = vmov 5  }
  0x18   :  { %v954_v6 = vld [vmem:[#allocation8 + $0x70] sm:$0xff]  ;;  %164 = vmatpush.msra.mxu1 %v146_v12  ;;  %v143_v15 = vld [vmem:[#allocation8 + $0x78] sm:$0xff]  ;;  %v886_v57 = vmov 7   ;;  %v887_v58 = vmov 8   ;;  %v888_v59 = vmov 11   ;;  %v889_v60 = vmov 13  }
  0x19   :  { %124 = vmatpush.msra.mxu0 %v948_v4  ;;  %v957_v7 = vld [vmem:[#allocation8 + $0x50] sm:$0xff]  ;;  %v142_v17 = vld [vmem:[#allocation8 + $0x58] sm:$0xff]  ;;  %v980_v61 = vpack.i.bf16 %v945_v3, %v943_v2  ;;  %s890_s0 = smov 96   ;;  %v998_v3 = vpack.i.bf16 %v951_v5, %v948_v4 }
  0x1a   :  { %v960_v8 = vld [vmem:[#allocation8 + $0x30] sm:$0xff]  ;;  %165 = vmatpush.msra.mxu1 %v145_v13  ;;  %v141_v18 = vld [vmem:[#allocation8 + $0x38] sm:$0xff]  ;;  %v986_v63 = vpack.i.bf16 %v957_v7, %v954_v6 }
  0x1b   :  { %125 = vmatpush.msra.mxu0 %v951_v5  ;;  %v964_v9 = vld [vmem:[#allocation8 + $0x10] sm:$0xff]  ;;  %v92_v16 = vld [vmem:[#allocation3] sm:$0xff]  ;;  %v226_v5 = vld [vmem:[#allocation6 + $0x20] sm:$0xff] }
  0x1c   :  { %166 = vmatpush.msra.mxu1 %v144_v14  ;;  %v140_v24 = vld [vmem:[#allocation8 + $0x18] sm:$0xff]  ;;  %v992_v1 = vpack.i.bf16 %v964_v9, %v960_v8  ;;  %v205_v4 = vld [vmem:[#allocation6 + $0x8] sm:$0xff] }
  0x1d   :  { %126 = vmatpush.msra.mxu0 %v954_v6  ;;  %135 = vrot.lane.b32.xlu0 %v92_v16, %s872_s16  ;;  %v219_v16 = vld [vmem:[#allocation6 + $0x18] sm:$0xff]  ;;  %v240_v19 = vld [vmem:[#allocation6 + $0x30] sm:$0xff]  ;;  %v261_v35 = vld [vmem:[#allocation6 + $0x48] sm:$0xff] }
  0x1e   :  { %167 = vmatpush.msra.mxu1 %v143_v15  ;;  %682 = vset.pattern.permute.xlu0 %v877_v36  ;;  %v247_v15 = vld [vmem:[#allocation6 + $0x38] sm:$0xff]  ;;  %v282_v36 = vld [vmem:[#allocation6 + $0x60] sm:$0xff] }
  0x1f   :  { %127 = vmatpush.msra.mxu0 %v957_v7 }
  0x20   :  { %168 = vmatpush.msra.mxu1 %v142_v17  ;;  %v212_v17 = vld [vmem:[#allocation6 + $0x10] sm:$0xff] }
  0x21   :  { %128 = vmatpush.msra.mxu0 %v960_v8 }
  0x22   :  { %169 = vmatpush.msra.mxu1 %v141_v18  ;;  %v233_v18 = vld [vmem:[#allocation6 + $0x28] sm:$0xff] }
  0x23   :  { %129 = vmatpush.msra.mxu0 %v964_v9 }
  0x24   :  { %170 = vmatpush.msra.mxu1 %v140_v24 }
  0x87   :  { %v98_v21 = vpop.permute.xlu0 %97 }
  0x88   :  { %vm99_vm2 = vcmp.eq.s32.totalorder %v95_v20, %v98_v21  ;;  %v275_v20 = vld [vmem:[#allocation6 + $0x58] sm:$0xff] }
  0x89   :  { %v644_v23 = vsel %vm99_vm2, 1.0, %v875_v22 }
  0x8a   :  { %645 = vmatmul.msk.f32.vlgmr.msra.gmra.mxu0 %vm110_vm1, %v644_v23 }
  0x8f   :  { %v970_v25 = vpop.permute.xlu0 %135 }
 0x107   :  { %v972_v26 = vpop.f32.mrf.mxu0 }
 0x108   :  { %v139_v27 = vsel %vm87_vm0, %v972_v26, %v970_v25 }
 0x109   :  { %646 = vmatmul.msk.f32.vlgmr.msra.gmra.mxu1 %vm110_vm1, %v139_v27  ;;  %v268_v27 = vld [vmem:[#allocation6 + $0x50] sm:$0xff] }
 0x186   :  { %v172_v29 = vpop.f32.mrf.mxu1 }
 0x187   :  { %v173_v30 = vadd.f32 %v736_v28, %v172_v29  ;;  %v254_v29 = vld [vmem:[#allocation6 + $0x40] sm:$0xff] }
 0x189   :  { %175 = vmax.xlane.f32.xlu1 %v173_v30 }
 0x1fc   :  { %v176_v31 = vpop.xlane.xlu1 %175 }
 0x1fd   :  { %v177_v32 = vsub.f32 %v173_v30, %v176_v31  ;;  %v197_v30 = vld [vmem:[#allocation6] sm:$0xff] }
 0x1ff   :  { %v178_v33 = vmul.f32 1.442695, %v177_v32 }
 0x201   :  { %740 = vpow2.f32 %v178_v33 }
 0x207   :  { %v741_v34 = vpop.eup %740 }
 0x208   :  { %180 = vadd.xlane.f32.xlu1 %v741_v34 }
 0x27b   :  { %v181_v37 = vpop.xlane.xlu1 %180 }
 0x27c   :  { %742 = vrcp.f32 %v181_v37  ;;  %v193_v41 = vand.u32 2147483648, %v181_v37  ;;  %v191_v43 = vand.u32 2147483647, %v181_v37  ;;  %vm187_vm4 = vweird.f32 %v181_v37 }
 0x27e   :  { %v194_v45 = vor.u32 1.1754944e-38, %v193_v41  ;;  %vm192_vm6 = vcmp.eq.f32.partialorder %v191_v43, 8.507059e+37 }
 0x282   :  { %v743_v38 = vpop.eup %742 }
 0x283   :  { %v183_v39 = vmul.f32 %v743_v38, %v181_v37  ;;  %vm188_vm3 = vweird.f32 %v743_v38  ;;  %v289_v37 = vld [vmem:[#allocation6 + $0x68] sm:$0xff] }
 0x284   :  { %vm189_vm5 = vmor %vm187_vm4, %vm188_vm3 }
 0x285   :  { %v184_v40 = vsub.f32 1.0, %v183_v39 }
 0x287   :  { %v185_v42 = vmul.f32 %v743_v38, %v184_v40 }
 0x289   :  { %v186_v44 = vadd.f32 %v743_v38, %v185_v42 }
 0x28b   :  { %v190_v46 = vsel %vm189_vm5, %v743_v38, %v186_v44  ;;  %v296_v44 = vld [vmem:[#allocation6 + $0x70] sm:$0xff] }
 0x28c   :  { %v195_v47 = vsel %vm192_vm6, %v194_v45, %v190_v46 }
 0x28d   :  { %v196_v48 = vmul.f32 %v741_v34, %v195_v47 }
 0x28f   :  { %221 = vperm.xlu1 %683, %v196_v48   ;;  %214 = vperm.xlu0 %682, %v196_v48  }
 0x290   :  { %200 = vperm.xlu2 %680, %v196_v48  }
 0x297   :  { %689 = vset.pattern.permute.xlu1 %v878_v49  ;;  %686 = vset.pattern.permute.xlu0 %v879_v50 }
 0x298   :  { %681 = vset.pattern.permute.xlu2 %v880_v51  ;;  %263 = vperm.xlu1 %689, %v196_v48  }
 0x299   :  { %242 = vperm.xlu0 %686, %v196_v48   ;;  %207 = vperm.xlu2 %681, %v196_v48  }
 0x2a0   :  { %692 = vset.pattern.permute.xlu1 %v881_v52 }
 0x2a1   :  { %690 = vset.pattern.permute.xlu0 %v882_v53  ;;  %684 = vset.pattern.permute.xlu2 %v883_v54 }
 0x2a2   :  { %284 = vperm.xlu1 %692, %v196_v48   ;;  %270 = vperm.xlu0 %690, %v196_v48  }
 0x2a3   :  { %228 = vperm.xlu2 %684, %v196_v48  }
 0x2aa   :  { %694 = vset.pattern.permute.xlu1 %v884_v55  ;;  %735 = vset.pattern.permute.xlu0 %v884_v55 }
 0x2ab   :  { %685 = vset.pattern.permute.xlu2 %v885_v56  ;;  %298 = vperm.xlu1 %694, %v196_v48  }
 0x2ac   :  { %235 = vperm.xlu2 %685, %v196_v48   ;;  %696 = vrot.lane.b32.xlu0 %v980_v61, %s890_s0 }
 0x2b3   :  { %706 = vrot.lane.b32.xlu1 %v986_v63, %s890_s0 }
 0x2b4   :  { %687 = vset.pattern.permute.xlu2 %v886_v57  ;;  %711 = vrot.lane.b32.xlu0 %v992_v1, %s890_s0 }
 0x2b5   :  { %249 = vperm.xlu2 %687, %v196_v48  }
 0x2bd   :  { %688 = vset.pattern.permute.xlu2 %v887_v58 }
 0x2be   :  { %256 = vperm.xlu2 %688, %v196_v48  }
 0x2c6   :  { %691 = vset.pattern.permute.xlu2 %v888_v59 }
 0x2c7   :  { %277 = vperm.xlu2 %691, %v196_v48  }
 0x2cf   :  { %693 = vset.pattern.permute.xlu2 %v889_v60 }
 0x2d0   :  { %291 = vperm.xlu2 %693, %v196_v48  }
 0x2d8   :  { %701 = vrot.lane.b32.xlu2 %v998_v3, %s890_s0 }
 0x2ea   :  { %v201_v62 = vpop.permute.xlu2 %200 }
 0x2eb   :  { %v203_v41 = vmul.f32 %v201_v62, %v197_v30  ;;  %v408_v30 = vld [vmem:[#allocation8 + $0x40] sm:$0xff] }
 0x2f3   :  { %v208_v0 = vpop.permute.xlu2 %207 }
 0x2f4   :  { %v210_v33 = vmul.f32 %v208_v0, %v205_v4  ;;  %v413_v4 = vld [vmem:[#allocation8 + $0xe0] sm:$0xff] }
 0x2f5   :  { %434 = vmatpush.msra.mxu3 %v413_v4  ;;  %v486_v4 = vld [vmem:[#allocation8 + $0x48] sm:$0xff] }
 0x2f6   :  { %v302_v51 = vadd.f32 %v210_v33, %v203_v41 }
 0x2fd   :  { %v229_v2 = vpop.permute.xlu2 %228 }
 0x2fe   :  { %v231_v34 = vmul.f32 %v229_v2, %v226_v5  ;;  %v412_v5 = vld [vmem:[#allocation8 + $0xc0] sm:$0xff] }
 0x2ff   :  { %435 = vmatpush.msra.mxu3 %v412_v5  ;;  %v485_v5 = vld [vmem:[#allocation8 + $0x28] sm:$0xff] }
 0x301   :  { %v222_v6 = vpop.permute.xlu1 %221  ;;  %v215_v11 = vpop.permute.xlu0 %214 }
 0x302   :  { %v224_v22 = vmul.f32 %v222_v6, %v219_v16  ;;  %v217_v23 = vmul.f32 %v215_v11, %v212_v17  ;;  %v1003_v16 = vld [vmem:[#allocation9 + $0x2] ss:$0 sm:$0xff]  ;;  %v86_v17 = vld [vmem:[%s1056_s1] sm:$0xff]  ;;  %s891_s1 = smov 64  }
 0x303   :  { %88 = vst.msk [vmem:[#allocation2] sm:$0xff] %vm87_vm0, %v86_v17  ;;  %356 = vrot.lane.b32.xlu1 %v1003_v16, %s890_s0  ;;  %v490_v17 = vld [vmem:[#allocation8 + $0xc8] sm:$0xff] }
 0x304   :  { %v303_v42 = vadd.f32 %v224_v22, %v217_v23  ;;  %v410_v23 = vld [vmem:[#allocation8 + $0x80] sm:$0xff] }
 0x306   :  { %v236_v10 = vpop.permute.xlu2 %235  ;;  %v309_v56 = vadd.f32 %v303_v42, %v302_v51 }
 0x307   :  { %v238_v24 = vmul.f32 %v236_v10, %v233_v18 }
 0x309   :  { %v304_v43 = vadd.f32 %v238_v24, %v231_v34 }
 0x30a   :  { %v264_v12 = vpop.permute.xlu1 %263  ;;  %v91_v18 = vld [vmem:[#allocation2] sm:$0xff] }
 0x30b   :  { %v243_v14 = vpop.permute.xlu0 %242  ;;  %v266_v47 = vmul.f32 %v264_v12, %v261_v35  ;;  %416 = vrot.lane.b32.xlu0 %v91_v18, %s872_s16  ;;  %v489_v18 = vld [vmem:[#allocation8 + $0xa8] sm:$0xff] }
 0x30c   :  { %v245_v31 = vmul.f32 %v243_v14, %v240_v19 }
 0x30f   :  { %v250_v7 = vpop.permute.xlu2 %249 }
 0x310   :  { %v252_v21 = vmul.f32 %v250_v7, %v247_v15 }
 0x312   :  { %v305_v38 = vadd.f32 %v252_v21, %v245_v31  ;;  %v411_v21 = vld [vmem:[#allocation8 + $0xa0] sm:$0xff] }
 0x313   :  { %436 = vmatpush.msra.mxu3 %v411_v21 }
 0x314   :  { %v285_v8 = vpop.permute.xlu1 %284  ;;  %v271_v28 = vpop.permute.xlu0 %270  ;;  %v310_v52 = vadd.f32 %v305_v38, %v304_v43 }
 0x315   :  { %v273_v39 = vmul.f32 %v271_v28, %v268_v27  ;;  %v287_v48 = vmul.f32 %v285_v8, %v282_v36  ;;  %437 = vmatpush.msra.mxu3 %v410_v23  ;;  %v409_v28 = vld [vmem:[#allocation8 + $0x60] sm:$0xff] }
 0x316   :  { %v313_v59 = vadd.f32 %v310_v52, %v309_v56  ;;  %v738_v52 = vld [vmem:[#allocation9] ss:$0 sm:$0xff] }
 0x317   :  { %438 = vmatpush.msra.mxu3 %v409_v28  ;;  %v484_v28 = vld [vmem:[#allocation8 + $0x8] sm:$0xff] }
 0x318   :  { %v257_v13 = vpop.permute.xlu2 %256 }
 0x319   :  { %v259_v40 = vmul.f32 %v257_v13, %v254_v29  ;;  %439 = vmatpush.msra.mxu3 %v408_v30 }
 0x31b   :  { %v306_v53 = vadd.f32 %v266_v47, %v259_v40 }
 0x31d   :  { %v299_v45 = vpop.permute.xlu1 %298 }
 0x31e   :  { %v301_v54 = vmul.f32 %v299_v45, %v296_v44  ;;  %v697_v0 = vpop.permute.xlu0 %696 }
 0x31f   :  { %v698_v2 = vunpack.i.l.bf16 %v697_v0  ;;  %v699_v10 = vunpack.i.h.bf16 %v697_v0 }
 0x321   :  { %v278_v9 = vpop.permute.xlu2 %277  ;;  %370 = vmatpush.msra.mxu2 %v698_v2 }
 0x322   :  { %v280_v32 = vmul.f32 %v278_v9, %v275_v20 }
 0x323   :  { %371 = vmatpush.msra.mxu2 %v699_v10 }
 0x324   :  { %v307_v49 = vadd.f32 %v280_v32, %v273_v39  ;;  %v406_v32 = vld [vmem:[#allocation8] sm:$0xff] }
 0x325   :  { %v707_v12 = vpop.permute.xlu1 %706 }
 0x326   :  { %v311_v57 = vadd.f32 %v307_v49, %v306_v53  ;;  %v708_v13 = vunpack.i.l.bf16 %v707_v12  ;;  %v709_v14 = vunpack.i.h.bf16 %v707_v12  ;;  %v712_v8 = vpop.permute.xlu0 %711 }
 0x327   :  { %v713_v9 = vunpack.i.l.bf16 %v712_v8  ;;  %v714_v15 = vunpack.i.h.bf16 %v712_v8 }
 0x32a   :  { %v292_v46 = vpop.permute.xlu2 %291 }
 0x32b   :  { %v294_v50 = vmul.f32 %v292_v46, %v289_v37 }
 0x32d   :  { %v308_v55 = vadd.f32 %v294_v50, %v287_v48 }
 0x32f   :  { %v312_v58 = vadd.f32 %v308_v55, %v301_v54 }
 0x331   :  { %v314_v60 = vadd.f32 %v312_v58, %v311_v57 }
 0x332   :  { %v702_v6 = vpop.permute.xlu2 %701 }
 0x333   :  { %v315_v62 = vadd.f32 %v314_v60, %v313_v59  ;;  %v703_v7 = vunpack.i.l.bf16 %v702_v6  ;;  %v704_v11 = vunpack.i.h.bf16 %v702_v6 }
 0x335   :  { %317 = vrot.lane.b32.xlu2 %v315_v62, %s872_s16  ;;  %372 = vmatpush.msra.mxu2 %v703_v7 }
 0x337   :  { %373 = vmatpush.msra.mxu2 %v704_v11 }
 0x339   :  { %374 = vmatpush.msra.mxu2 %v708_v13 }
 0x33b   :  { %375 = vmatpush.msra.mxu2 %v709_v14 }
 0x33d   :  { %376 = vmatpush.msra.mxu2 %v713_v9 }
 0x33f   :  { %377 = vmatpush.msra.mxu2 %v714_v15  ;;  %v491_v15 = vld [vmem:[#allocation8 + $0xe8] sm:$0xff] }
 0x340   :  { %512 = vmatpush.msrb.mxu0 %v491_v15 }
 0x342   :  { %513 = vmatpush.msrb.mxu0 %v490_v17 }
 0x344   :  { %514 = vmatpush.msrb.mxu0 %v489_v18 }
 0x375   :  { %v357_v22 = vpop.permute.xlu1 %356 }
 0x37d   :  { %v417_v49 = vpop.permute.xlu0 %416 }
 0x38f   :  { %v318_v19 = vpop.permute.xlu2 %317 }
 0x390   :  { %v320_v20 = vsel %vm87_vm0, %v972_v26, %v318_v19  ;;  %v407_v26 = vld [vmem:[#allocation8 + $0x20] sm:$0xff]  ;;  %v488_v19 = vld [vmem:[#allocation8 + $0x88] sm:$0xff] }
 0x391   :  { %647 = vmatmul.msk.f32.vlgmr.msra.gmra.mxu2 %vm110_vm1, %v320_v20  ;;  %440 = vmatpush.msra.mxu3 %v407_v26  ;;  %v487_v20 = vld [vmem:[#allocation8 + $0x68] sm:$0xff] }
 0x392   :  { %515 = vmatpush.msrb.mxu0 %v488_v19 }
 0x393   :  { %441 = vmatpush.msra.mxu3 %v406_v32 }
 0x394   :  { %516 = vmatpush.msrb.mxu0 %v487_v20 }
 0x396   :  { %517 = vmatpush.msrb.mxu0 %v486_v4 }
 0x398   :  { %518 = vmatpush.msrb.mxu0 %v485_v5 }
 0x39a   :  { %519 = vmatpush.msrb.mxu0 %v484_v28 }
 0x414   :  { %v379_v24 = vpop.f32.mrf.mxu2 }
 0x415   :  { %v380_v27 = vadd.f32 %v379_v24, %v357_v22 }
 0x417   :  { %v382_v29 = vmin.f32 %v380_v27, 0.0  ;;  %vm403_vm11 = vcmp.gt.f32.partialorder %v380_v27, 0.0 }
 0x419   :  { %v383_v31 = vmul.f32 0.5, %v382_v29 }
 0x41b   :  { %744 = vtanh.f32 %v383_v31  ;;  %v739_v31 = vld [vmem:[#allocation9 + $0x1] ss:$0 sm:$0xff] }
 0x421   :  { %v745_v33 = vpop.eup %744 }
 0x422   :  { %v386_v34 = vsub.f32 1.0, %v745_v33  ;;  %v385_v43 = vmul.f32 2.0, %v745_v33 }
 0x424   :  { %746 = vrcp.f32 %v386_v34  ;;  %v398_v38 = vand.u32 2147483648, %v386_v34  ;;  %v396_v40 = vand.u32 2147483647, %v386_v34  ;;  %vm392_vm8 = vweird.f32 %v386_v34 }
 0x426   :  { %v399_v42 = vor.u32 1.1754944e-38, %v398_v38  ;;  %vm397_vm10 = vcmp.eq.f32.partialorder %v396_v40, 8.507059e+37 }
 0x42a   :  { %v747_v35 = vpop.eup %746 }
 0x42b   :  { %v388_v36 = vmul.f32 %v747_v35, %v386_v34  ;;  %vm393_vm7 = vweird.f32 %v747_v35 }
 0x42c   :  { %vm394_vm9 = vmor %vm392_vm8, %vm393_vm7 }
 0x42d   :  { %v389_v37 = vsub.f32 1.0, %v388_v36 }
 0x42f   :  { %v390_v39 = vmul.f32 %v747_v35, %v389_v37 }
 0x431   :  { %v391_v41 = vadd.f32 %v747_v35, %v390_v39 }
 0x433   :  { %v395_v44 = vsel %vm394_vm9, %v747_v35, %v391_v41 }
 0x434   :  { %v400_v45 = vsel %vm397_vm10, %v399_v42, %v395_v44 }
 0x435   :  { %v401_v46 = vmul.f32 %v400_v45, %v385_v43 }
 0x437   :  { %v402_v47 = vmul.f32 1.6732632, %v401_v46 }
 0x439   :  { %v404_v48 = vsel %vm403_vm11, %v380_v27, %v402_v47 }
 0x43a   :  { %v405_v50 = vmul.f32 1.050701, %v404_v48 }
 0x43c   :  { %v419_v51 = vsel %vm87_vm0, %v405_v50, %v417_v49 }
 0x43d   :  { %648 = vmatmul.msk.f32.vlgmr.msra.gmra.mxu3 %vm110_vm1, %v419_v51 }
 0x4c0   :  { %v443_v53 = vpop.f32.mrf.mxu3 }
 0x4c1   :  { %v444_v54 = vadd.f32 %v738_v52, %v443_v53 }
 0x4c3   :  { %466 = vrot.lane.b32.xlu2 %v444_v54, %s872_s16  ;;  %v649_v55 = vmul.f32 -1.442695, %v444_v54 }
 0x4c5   :  { %748 = vpow2.f32 %v649_v55 }
 0x4cb   :  { %v749_v56 = vpop.eup %748 }
 0x4cc   :  { %v449_v57 = vadd.f32 1.0, %v749_v56 }
 0x4ce   :  { %750 = vrcp.f32 %v449_v57  ;;  %v461_v2 = vand.u32 2147483648, %v449_v57  ;;  %vm455_vm13 = vweird.f32 %v449_v57  ;;  %v459_v10 = vand.u32 2147483647, %v449_v57 }
 0x4d0   :  { %v462_v7 = vor.u32 1.1754944e-38, %v461_v2  ;;  %vm460_vm15 = vcmp.eq.f32.partialorder %v459_v10, 8.507059e+37 }
 0x4d4   :  { %v751_v58 = vpop.eup %750 }
 0x4d5   :  { %v451_v59 = vmul.f32 %v751_v58, %v449_v57  ;;  %vm456_vm12 = vweird.f32 %v751_v58 }
 0x4d6   :  { %vm457_vm14 = vmor %vm455_vm13, %vm456_vm12 }
 0x4d7   :  { %v452_v60 = vsub.f32 1.0, %v451_v59 }
 0x4d9   :  { %v453_v62 = vmul.f32 %v751_v58, %v452_v60 }
 0x4db   :  { %v454_v0 = vadd.f32 %v751_v58, %v453_v62 }
 0x4dd   :  { %v458_v6 = vsel %vm457_vm14, %v751_v58, %v454_v0 }
 0x4de   :  { %v463_v12 = vsel %vm460_vm15, %v462_v7, %v458_v6 }
 0x4df   :  { %v476_v21 = vsub.f32 1.0, %v463_v12  ;;  %v482_v23 = vmul.f32 %v463_v12, %v417_v49 }
 0x51d   :  { %v467_v11 = vpop.permute.xlu2 %466 }
 0x51e   :  { %v469_v13 = vmul.f32 %v467_v11, %v463_v12 }
 0x520   :  { %471 = vrot.lane.b32.xlu1 %v469_v13, %s891_s1 }
 0x592   :  { %v472_v14 = vpop.permute.xlu1 %471 }
 0x593   :  { %v474_v8 = vadd.f32 %v472_v14, %v444_v54 }
 0x595   :  { %752 = vtanh.f32 %v474_v8 }
 0x59b   :  { %v753_v9 = vpop.eup %752 }
 0x59c   :  { %478 = vrot.lane.b32.xlu0 %v753_v9, %s890_s0 }
 0x60e   :  { %v479_v22 = vpop.permute.xlu0 %478 }
 0x60f   :  { %v481_v24 = vmul.f32 %v479_v22, %v476_v21 }
 0x611   :  { %v483_v27 = vadd.f32 %v482_v23, %v481_v24 }
 0x613   :  { %494 = vrot.lane.b32.xlu2 %v483_v27, %s890_s0 }
 0x61b   :  { %716 = vrot.lane.b32.xlu2 %v980_v61, %s891_s1 }
 0x66d   :  { %v1021_v29 = vpop.permute.xlu2 %494 }
 0x66e   :  { %625 = vst.msk [vmem:[#allocation2] sm:$0xff] %vm87_vm0, %v1021_v29  ;;  %v497_v30 = vsel %vm87_vm0, %v1021_v29, %v970_v25 }
 0x66f   :  { %650 = vmatmul.msk.f32.vlgmr.msrb.gmra.mxu0 %vm110_vm1, %v497_v30 }
 0x675   :  { %v717_v61 = vpop.permute.xlu2 %716 }
 0x676   :  { %v718_v47 = vunpack.i.l.bf16 %v717_v61  ;;  %v719_v48 = vunpack.i.h.bf16 %v717_v61 }
 0x678   :  { %601 = vmatpush.msrb.mxu1 %v718_v47 }
 0x67a   :  { %602 = vmatpush.msrb.mxu1 %v719_v48 }
 0x6ec   :  { %v521_v26 = vpop.f32.mrf.mxu0 }
 0x6ed   :  { %v522_v32 = vadd.f32 %v739_v31, %v521_v26 }
 0x6ef   :  { %544 = vrot.lane.b32.xlu1 %v522_v32, %s872_s16  ;;  %v651_v33 = vmul.f32 -1.442695, %v522_v32 }
 0x6f1   :  { %754 = vpow2.f32 %v651_v33 }
 0x6f7   :  { %v755_v34 = vpop.eup %754  ;;  %721 = vrot.lane.b32.xlu1 %v998_v3, %s891_s1 }
 0x6f8   :  { %v527_v35 = vadd.f32 1.0, %v755_v34 }
 0x6fa   :  { %756 = vrcp.f32 %v527_v35  ;;  %v539_v41 = vand.u32 2147483648, %v527_v35  ;;  %vm533_vm3 = vweird.f32 %v527_v35  ;;  %v537_v42 = vand.u32 2147483647, %v527_v35 }
 0x6fc   :  { %v540_v44 = vor.u32 1.1754944e-38, %v539_v41  ;;  %vm538_vm5 = vcmp.eq.f32.partialorder %v537_v42, 8.507059e+37 }
 0x6ff   :  { %731 = vrot.lane.b32.xlu1 %v992_v1, %s891_s1 }
 0x700   :  { %v757_v36 = vpop.eup %756 }
 0x701   :  { %v529_v37 = vmul.f32 %v757_v36, %v527_v35  ;;  %vm534_vm2 = vweird.f32 %v757_v36 }
 0x702   :  { %vm535_vm4 = vmor %vm533_vm3, %vm534_vm2 }
 0x703   :  { %v530_v38 = vsub.f32 1.0, %v529_v37 }
 0x705   :  { %v531_v39 = vmul.f32 %v757_v36, %v530_v38 }
 0x707   :  { %v532_v40 = vadd.f32 %v757_v36, %v531_v39 }
 0x709   :  { %v536_v43 = vsel %vm535_vm4, %v757_v36, %v532_v40 }
 0x70a   :  { %v541_v45 = vsel %vm538_vm5, %v540_v44, %v536_v43 }
 0x70b   :  { %v554_v58 = vsub.f32 1.0, %v541_v45  ;;  %v560_v60 = vmul.f32 %v541_v45, %v970_v25 }
 0x761   :  { %v545_v3 = vpop.permute.xlu1 %544 }
 0x762   :  { %v547_v46 = vmul.f32 %v545_v3, %v541_v45 }
 0x764   :  { %549 = vrot.lane.b32.xlu0 %v547_v46, %s891_s1 }
 0x769   :  { %v722_v1 = vpop.permute.xlu1 %721 }
 0x76a   :  { %v723_v49 = vunpack.i.l.bf16 %v722_v1  ;;  %v724_v50 = vunpack.i.h.bf16 %v722_v1 }
 0x76c   :  { %726 = vrot.lane.b32.xlu0 %v986_v63, %s891_s1  ;;  %603 = vmatpush.msrb.mxu1 %v723_v49 }
 0x76e   :  { %604 = vmatpush.msrb.mxu1 %v724_v50 }
 0x774   :  { %587 = vrot.lane.b32.xlu0 %v1003_v16, %s891_s1  ;;  %v732_v16 = vpop.permute.xlu1 %731 }
 0x775   :  { %v733_v56 = vunpack.i.l.bf16 %v732_v16  ;;  %v734_v57 = vunpack.i.h.bf16 %v732_v16 }
 0x7d6   :  { %v550_v51 = vpop.permute.xlu0 %549 }
 0x7d7   :  { %v552_v52 = vadd.f32 %v550_v51, %v522_v32 }
 0x7d9   :  { %758 = vtanh.f32 %v552_v52 }
 0x7de   :  { %v727_v53 = vpop.permute.xlu0 %726 }
 0x7df   :  { %v759_v54 = vpop.eup %758  ;;  %v728_v55 = vunpack.i.l.bf16 %v727_v53  ;;  %v729_v63 = vunpack.i.h.bf16 %v727_v53 }
 0x7e0   :  { %556 = vrot.lane.b32.xlu2 %v759_v54, %s890_s0 }
 0x7e1   :  { %605 = vmatpush.msrb.mxu1 %v728_v55 }
 0x7e3   :  { %606 = vmatpush.msrb.mxu1 %v729_v63 }
 0x7e5   :  { %607 = vmatpush.msrb.mxu1 %v733_v56 }
 0x7e6   :  { %v588_v10 = vpop.permute.xlu0 %587 }
 0x7e7   :  { %608 = vmatpush.msrb.mxu1 %v734_v57 }
 0x83a   :  { %v557_v59 = vpop.permute.xlu2 %556 }
 0x83b   :  { %v559_v62 = vmul.f32 %v557_v59, %v554_v58 }
 0x83d   :  { %v561_v0 = vadd.f32 %v560_v60, %v559_v62 }
 0x83f   :  { %v562_v2 = vsel %vm87_vm0, %v1021_v29, %v561_v0 }
 0x840   :  { %652 = vmatmul.msk.f32.vlgmr.msrb.gmra.mxu1 %vm110_vm1, %v562_v2 }
 0x8bd   :  { %v610_v6 = vpop.f32.mrf.mxu1 }
 0x8be   :  { %v611_v7 = vadd.f32 %v610_v6, %v588_v10 }
 0x8c0   :  { %v613_v11 = vsel %vm110_vm1, %v611_v7, -inf }
 0x8c1   :  { %614 = vmax.xlane.f32.xlu2 %v613_v11 }
 0x934   :  { %v615_v12 = vpop.xlane.xlu2 %614 }
 0x935   :  { %v616_v13 = vsub.f32 %v611_v7, %v615_v12 }
 0x937   :  { %v617_v14 = vmul.f32 1.442695, %v616_v13 }
 0x939   :  { %760 = vpow2.f32 %v617_v14 }
 0x93f   :  { %v761_v8 = vpop.eup %760 }
 0x940   :  { %v619_v25 = vsel %vm110_vm1, %v761_v8, 0.0 }
 0x941   :  { %620 = vadd.xlane.f32.xlu1 %v619_v25 }
 0x9b4   :  { %v621_v9 = vpop.xlane.xlu1 %620 }
 0x9b5   :  { %762 = vlog2.f32 %v621_v9 }
 0x9bb   :  { %v763_v15 = vpop.eup %762 }
 0x9bc   :  { %v623_v17 = vmul.f32 0.6931472, %v763_v15 }
 0x9be   :  { %v624_v18 = vsub.f32 %v616_v13, %v623_v17 }
 0x9c0   :  { %632 = vrot.lane.b32.xlu0 %v624_v18, %s891_s1 }
 0x9c8   :  { %627 = vrot.lane.b32.xlu0 %v561_v0, %s890_s0 }
 0xa32   :  { %v633_v19 = vpop.permute.xlu0 %632 }
 0xa33   :  { %v635_v20 = vsel %vm110_vm1, %v562_v2, %v633_v19 }
 0xa34   :  { %636 = vst [vmem:[%s1061_s6] sm:$0xff] %v635_v20 }
 0xa3a   :  { %v628_v4 = vpop.permute.xlu0 %627 }
 0xa3b   :  { %630 = vst.msk [vmem:[#allocation3] sm:$0xff] %vm87_vm0, %v628_v4 }
 0xa3c   :  { %641 = vsyncpa [#allocation5], 1 }
 0xa3d   :  { %642 = vsyncpa [#allocation7], 1 }
 0xa3e   :  { %643 = vsyncpa [#allocation10], 1 }

</bundles_post_ra>
